<compile_context>
chip_gen: v6e
topology: v6e:2x2x1
jax: 0.10.0
libtpu: 0.0.40
codegen_flags: <defaults>
</compile_context>

<pallas_src>
import functools

import jax
import jax.numpy as jnp
from jax.experimental import pallas as pl
from jax.experimental.pallas import tpu as pltpu


def _phase_weights(factor: int):
    """Per-phase (w_prev, w_cur, w_next) for linear, align_corners=False."""
    weights = []
    for r in range(factor):
        d = (2 * r + 1 - factor) / (2.0 * factor)  # src offset within a cell
        if d < 0:
            weights.append((-d, 1.0 + d, 0.0))
        else:
            weights.append((0.0, 1.0 - d, d))
    return weights


def _unpool_kernel(x_ref, o_ref, *, factor: int, method: str):
    x = x_ref[...]                                    # (TR, L), native dtype
    if method == "nearest":
        for r in range(factor):
            o_ref[r, :, :] = x
        return

    # 'interpolate' == PyTorch linear, align_corners=False.
    L = x.shape[-1]
    xf = x.astype(jnp.float32)
    if L > 1:
        x_prev = jnp.concatenate([xf[:, :1], xf[:, : L - 1]], axis=1)
        x_next = jnp.concatenate([xf[:, 1:], xf[:, L - 1:]], axis=1)
    else:
        x_prev = xf
        x_next = xf
    for r, (wp, wc, wn) in enumerate(_phase_weights(factor)):
        slab = wc * xf
        if wp != 0.0:
            slab = slab + wp * x_prev
        if wn != 0.0:
            slab = slab + wn * x_next
        o_ref[r, :, :] = slab.astype(o_ref.dtype)


def _pick_row_tile(R: int, L: int, factor: int, itemsize: int) -> int:
    # Budget ~8 MiB for the double-buffered (input + output) blocks so the
    # pipeline plus f32 intermediates stays inside the default scoped-VMEM
    # limits of v5e / v6e / v7x.
    budget = 8 * 1024 * 1024
    per_row = 2 * L * (1 + factor) * max(itemsize, 1)
    tr = max(8, budget // per_row)
    tr = min(tr, 2048)                 # per-step-overhead amortization cap
    tr = (tr // 8) * 8
    if tr >= R:
        return R                       # single full block (small inputs)
    return max(8, tr)


@functools.partial(jax.jit, static_argnames=("factor", "method"))
def unpooling1d(x, factor: int = 2, method: str = "nearest"):
    """Pallas equivalent of Unpooling1d(factor, method).forward(x).

    x: (N, C, L)  ->  (N, C, L * factor), same dtype as x.
    """
    if method not in ("nearest", "interpolate"):
        raise ValueError(f"unknown method {method!r}")
    factor = int(factor)
    N, C, L = x.shape
    R = N * C
    L_out = L * factor
    x2 = x.reshape(R, L)               # native dtype; no host-side upcast

    itemsize = x.dtype.itemsize
    tr = _pick_row_tile(R, L, factor, itemsize)
    grid = (pl.cdiv(R, tr),)

    flops = 0 if method == "nearest" else 4 * R * L * factor
    cost = pl.CostEstimate(
        flops=flops,
        transcendentals=0,
        bytes_accessed=R * L * itemsize * (1 + factor),
    )

    out_perm = pl.pallas_call(
        functools.partial(_unpool_kernel, factor=factor, method=method),
        out_shape=jax.ShapeDtypeStruct((factor, R, L), x.dtype),
        grid=grid,
        in_specs=[pl.BlockSpec((tr, L), lambda i: (i, 0))],
        out_specs=pl.BlockSpec((factor, tr, L), lambda i: (0, i, 0)),
        compiler_params=pltpu.CompilerParams(
            dimension_semantics=("parallel",),
            vmem_limit_bytes=32 * 1024 * 1024,
        ),
        cost_estimate=cost,
    )(x2)

    # Interleave phases: out[., i*factor + r] = out_perm[r, ., i].
    out = jnp.transpose(out_perm, (1, 2, 0)).reshape(N, C, L_out)
    return out


def _linear_reference(x, factor):
    # PyTorch F.interpolate(mode='linear', align_corners=False) reference.
    L = x.shape[-1]
    j = jnp.arange(L * factor)
    src = jnp.clip((j + 0.5) / factor - 0.5, 0.0, L - 1)
    i0 = jnp.floor(src).astype(jnp.int32)
    i1 = jnp.minimum(i0 + 1, L - 1)
    w1 = (src - i0.astype(jnp.float32)).astype(x.dtype)
    return x[..., i0] * (1.0 - w1) + x[..., i1] * w1


if __name__ == "__main__":
    key = jax.random.PRNGKey(0)
    N, C, L = 2, 4, 16
    x = jax.random.normal(key, (N, C, L), dtype=jnp.float32)

    for factor in (2, 3):
        # method='nearest' (module default): equals element repeat along L.
        y_nearest = jax.block_until_ready(
            unpooling1d(x, factor=factor, method="nearest"))
        assert y_nearest.shape == (N, C, L * factor)
        ref_nearest = jnp.repeat(x, factor, axis=-1)
        assert jnp.allclose(y_nearest, ref_nearest, atol=1e-6, rtol=1e-6)

        # method='interpolate': PyTorch linear, align_corners=False.
        y_linear = jax.block_until_ready(
            unpooling1d(x, factor=factor, method="interpolate"))
        assert y_linear.shape == (N, C, L * factor)
        ref_linear = _linear_reference(x, factor)
        assert jnp.allclose(y_linear, ref_linear, atol=1e-5, rtol=1e-5)

    print("KERNEL_OK")
</pallas_src>

<mosaic_0001>
module attributes {stable_mosaic.version = 11 : i64} {
  func.func @_unpool_kernel(%arg0: i32, %arg1: memref<8x16xf32, #tpu.memory_space<vmem>>, %arg2: memref<2x8x16xf32, #tpu.memory_space<vmem>>) attributes {dimension_semantics = [#tpu.dimension_semantics<parallel>], iteration_bounds = array<i64: 1>, scalar_prefetch = 0 : i64, scratch_operands = 0 : i64, tpu.core_type = #tpu.core_type<tc>, window_params = [{transform_indices = @transform_0, window_bounds = array<i64: 8, 16>}, {transform_indices = @transform_1, window_bounds = array<i64: 2, 8, 16>}]} {
    %c0 = arith.constant 0 : index
    %c0_0 = arith.constant 0 : index
    %0 = vector.load %arg1[%c0, %c0_0] : memref<8x16xf32, #tpu.memory_space<vmem>>, vector<8x16xf32>
    %c0_1 = arith.constant 0 : index
    %c0_2 = arith.constant 0 : index
    %c0_3 = arith.constant 0 : index
    %1 = vector.load %arg2[%c0_1, %c0_2, %c0_3] : memref<2x8x16xf32, #tpu.memory_space<vmem>>, vector<1x8x16xf32>
    %2 = vector.shape_cast %1 : vector<1x8x16xf32> to vector<8x16xf32>
    %3 = vector.shape_cast %0 : vector<8x16xf32> to vector<1x8x16xf32>
    tpu.vector_store %arg2[%c0_1, %c0_2, %c0_3], %3 {strides = array<i32>} : memref<2x8x16xf32, #tpu.memory_space<vmem>>, vector<1x8x16xf32>,
    %c1 = arith.constant 1 : index
    %c0_4 = arith.constant 0 : index
    %c0_5 = arith.constant 0 : index
    %4 = vector.load %arg2[%c1, %c0_4, %c0_5] : memref<2x8x16xf32, #tpu.memory_space<vmem>>, vector<1x8x16xf32>
    %5 = vector.shape_cast %4 : vector<1x8x16xf32> to vector<8x16xf32>
    %6 = vector.shape_cast %0 : vector<8x16xf32> to vector<1x8x16xf32>
    tpu.vector_store %arg2[%c1, %c0_4, %c0_5], %6 {strides = array<i32>} : memref<2x8x16xf32, #tpu.memory_space<vmem>>, vector<1x8x16xf32>,
    return
  }
  func.func @transform_0(%arg0: i32) -> (i32, i32) {
    %c0_i32 = arith.constant 0 : i32
    %c0_i32_0 = arith.constant 0 : i32
    return %arg0, %c0_i32 : i32, i32
  }
  func.func @transform_1(%arg0: i32) -> (i32, i32, i32) {
    %c0_i32 = arith.constant 0 : i32
    %c0_i32_0 = arith.constant 0 : i32
    %c0_i32_1 = arith.constant 0 : i32
    return %c0_i32, %arg0, %c0_i32_0 : i32, i32, i32
  }
}

</mosaic_0001>

<bundles_post_ra>
// kernel: unpooling1d.1
= control target key start
LH: loop header
LB: loop body
LE: loop exit
PB: predicated region body
PF: predicated region fallthrough
CT: control target
= control target key end

     0   :  { %6 = vsyncpa [#allocation3], 0  ;;  %s54_s6 = smov [#allocation2]   ;;  %s74_s0 = inlined_call_operand.hbm [shape: f32[8,16], index: 0, kind: input, shape index: {}]   ;;  %s75_s1 = inlined_call_operand.vmem [shape: f32[2,8,16], index: 1, kind: output, shape index: {}]  }
   0x1   :  { %s13_s7 = sshll.u32 %s54_s6, 4  ;;  %s14_s7 = int_to_ptr.vmem [resolvable:$true] %s13_s7 }
   0x2   :  { %s40_s8 = scalar_lea.vmem %s14_s7, 128  ;;  %p45_p1 = scmp.lt.s32.totalorder %s14_s7, %s14_s7 }
   0x3   :  { %p41_p0 = scmp.ne.s32.totalorder %s14_s7, %s40_s8  ;;  %p46_p2 = scmp.lt.s32.totalorder %s40_s8, %s40_s8 }
   0x5   :  { %p47_p3 = por %p46_p2, %p45_p1 }
   0x7   :  { %p48_p4 = pnand %p47_p3, %p41_p0 }
   0x9   :  { %51 = shalt.err (!%p48_p4)
}
   0xa   :  { %16 = dma.hbm_to_vmem [thread:$0]  %s74_s0, 128, %s14_s7, [#allocation3]  }
   0xb   :  { %52 = dma.done.wait [#allocation3], 128  }
   0xc   :  { %53 = vsyncadd [#allocation3], 4294967168  ;;  %vm21_vm0 = vcmask 130048   ;;  %v20_v0 = vld [vmem:[#allocation2] sm:$0xff] }
   0xd   :  { %22 = vst.msk [vmem:[%s75_s1] sm:$0xff] %vm21_vm0, %v20_v0  ;;  %30 = vst.msk [vmem:[%s75_s1 + $0x8] sm:$0xff] %vm21_vm0, %v20_v0 }
   0xe   :  { %29 = vsyncpa [#allocation3], 1 }

</bundles_post_ra>
